<compile_context>
chip_gen: v7x
topology: tpu7x:2x2x1
jax: 0.10.0
libtpu: 0.0.40
codegen_flags: <defaults>
</compile_context>

<pallas_src>
import functools

import numpy as np
import jax
import jax.numpy as jnp
from jax.experimental import pallas as pl
from jax.experimental.pallas import tpu as pltpu


# ----------------------------------------------------------------------------
# Linear operators for adaptive average pooling / bilinear upsampling
# (separable, so per-axis matrices are kron'ed).
# ----------------------------------------------------------------------------
def _adaptive_pool_matrix(in_size, out_size):
    """Row i averages x[start:end], matching torch.nn.AdaptiveAvgPool2d."""
    P = np.zeros((out_size, in_size), dtype=np.float32)
    for i in range(out_size):
        s = (i * in_size) // out_size
        e = -((-(i + 1) * in_size) // out_size)  # ceil((i+1)*in/out)
        P[i, s:e] = 1.0 / (e - s)
    return P


def _bilinear_up_matrix(out_size, in_size):
    """F.interpolate(mode='bilinear', align_corners=True), one axis."""
    U = np.zeros((out_size, in_size), dtype=np.float32)
    if in_size == 1 or out_size == 1:
        U[:, 0] = 1.0
        return U
    scale = (in_size - 1) / (out_size - 1)
    for i in range(out_size):
        src = i * scale
        i0 = min(int(np.floor(src)), in_size - 1)
        i1 = min(i0 + 1, in_size - 1)
        f = src - i0
        U[i, i0] += 1.0 - f
        U[i, i1] += f
    return U


# ----------------------------------------------------------------------------
# Kernel A: fused pool -> (scaled) 1x1 conv -> BN shift -> ReLU for ALL bins.
#   grid = (N, C_in tiles);  C_in axis is a reduction ("arbitrary") with a
#   VMEM f32 accumulator.  Output is the tiny (N, nb*C_red, sum(b^2)) tensor.
# ----------------------------------------------------------------------------
def _pool_conv_kernel(x_ref, poolT_ref, w_ref, shift_ref, mask_ref,
                      y_ref, acc_ref):
    c = pl.program_id(1)

    @pl.when(c == 0)
    def _():
        acc_ref[...] = jnp.zeros_like(acc_ref)

    xb = x_ref[0].astype(jnp.bfloat16)                          # (tc, HW)
    pooled = jnp.dot(xb, poolT_ref[...],
                     preferred_element_type=jnp.float32)         # (tc, B2)
    acc_ref[...] += jnp.dot(w_ref[...], pooled.astype(jnp.bfloat16),
                            preferred_element_type=jnp.float32)  # (M, B2)

    @pl.when(c == pl.num_programs(1) - 1)
    def _():
        # BN scale is folded into w; add shift, ReLU, then mask out the
        # cross-bin blocks so the fused upsample matmul only sees its own bin.
        y_ref[0] = (jnp.maximum(acc_ref[...] + shift_ref[...], 0.0)
                    * mask_ref[...]).astype(y_ref.dtype)


def ppm_pool_conv(x_flat, poolT, w_cat, shift_cat, mask, *, c_tile=512):
    N, C_in, HW = x_flat.shape
    M, B2 = mask.shape
    c_tile = min(c_tile, C_in)
    if C_in % c_tile != 0 or (c_tile != C_in and c_tile % 8 != 0):
        # TODO(synk): mask the remainder C_in tile instead of falling back.
        c_tile = C_in
    n_c = C_in // c_tile

    return pl.pallas_call(
        _pool_conv_kernel,
        out_shape=jax.ShapeDtypeStruct((N, M, B2), jnp.float32),
        grid_spec=pltpu.PrefetchScalarGridSpec(
            num_scalar_prefetch=0,
            grid=(N, n_c),
            in_specs=[
                pl.BlockSpec((1, c_tile, HW), lambda n, c: (n, c, 0)),
                pl.BlockSpec((HW, B2), lambda n, c: (0, 0)),
                pl.BlockSpec((M, c_tile), lambda n, c: (0, c)),
                pl.BlockSpec((M, 1), lambda n, c: (0, 0)),
                pl.BlockSpec((M, B2), lambda n, c: (0, 0)),
            ],
            out_specs=pl.BlockSpec((1, M, B2), lambda n, c: (n, 0, 0)),
            scratch_shapes=[pltpu.VMEM((M, B2), jnp.float32)],
        ),
        compiler_params=pltpu.CompilerParams(
            dimension_semantics=("parallel", "arbitrary"),
            vmem_limit_bytes=32 * 1024 * 1024),
    )(x_flat, poolT, w_cat, shift_cat, mask)


# ----------------------------------------------------------------------------
# Kernel B: fused bilinear upsample for ALL bins + passthrough copy of x,
# written directly into the concatenated output layout (no wrapper concat).
#   grid = (N, HW tiles), both axes "parallel", lane-dense HW output tiles.
# ----------------------------------------------------------------------------
def _upsample_concat_kernel(x_ref, y_ref, upT_ref, o_ref, *, c_in):
    up = jnp.dot(y_ref[0].astype(jnp.bfloat16), upT_ref[...],
                 preferred_element_type=jnp.float32)             # (M, thw)
    m = up.shape[0]
    o_ref[0, pl.ds(0, c_in), :] = x_ref[0]                       # passthrough x
    o_ref[0, pl.ds(c_in, m), :] = up.astype(o_ref.dtype)         # all branches


def ppm_upsample_concat(x_flat, y, upT, *, hw_tile=512):
    N, C_in, HW = x_flat.shape
    _, M, B2 = y.shape
    C_total = C_in + M
    hw_tile = min(hw_tile, HW)
    if hw_tile != HW and hw_tile % 128 != 0:
        hw_tile = HW
    n_hw = pl.cdiv(HW, hw_tile)

    kernel = functools.partial(_upsample_concat_kernel, c_in=C_in)
    return pl.pallas_call(
        kernel,
        out_shape=jax.ShapeDtypeStruct((N, C_total, HW), jnp.float32),
        grid_spec=pltpu.PrefetchScalarGridSpec(
            num_scalar_prefetch=0,
            grid=(N, n_hw),
            in_specs=[
                pl.BlockSpec((1, C_in, hw_tile), lambda n, h: (n, 0, h)),
                pl.BlockSpec((1, M, B2), lambda n, h: (n, 0, 0)),
                pl.BlockSpec((B2, hw_tile), lambda n, h: (0, h)),
            ],
            out_specs=pl.BlockSpec((1, C_total, hw_tile), lambda n, h: (n, 0, h)),
        ),
        compiler_params=pltpu.CompilerParams(
            dimension_semantics=("parallel", "parallel"),
            vmem_limit_bytes=32 * 1024 * 1024),
    )(x_flat, y, upT)


# ----------------------------------------------------------------------------
# Module wrapper.
# ----------------------------------------------------------------------------
class PPM:
    """JAX/Pallas port of the PyTorch PPM module (inference-mode BatchNorm)."""

    def __init__(self, in_dim, reduction_dim, bins, key):
        self.in_dim = in_dim
        self.reduction_dim = reduction_dim
        self.bins = tuple(bins)
        eps = 1e-5

        w_blocks, shift_blocks = [], []
        self._ref_params = []  # f32 per-bin params for the pure-JAX reference
        for _ in self.bins:
            key, kw, kg, kb = jax.random.split(key, 4)
            # Conv2d(in_dim, reduction_dim, kernel_size=1, bias=False)
            conv_w = 0.1 * jax.random.normal(
                kw, (reduction_dim, in_dim), jnp.float32)
            # BatchNorm affine params + running stats (eval mode).
            gamma = 1.0 + 0.1 * jax.random.normal(
                kg, (reduction_dim,), jnp.float32)
            beta = 0.1 * jax.random.normal(kb, (reduction_dim,), jnp.float32)
            running_mean = jnp.zeros((reduction_dim,), jnp.float32)
            running_var = jnp.ones((reduction_dim,), jnp.float32)
            scale = gamma / jnp.sqrt(running_var + eps)
            shift = beta - running_mean * scale
            w_scaled = scale[:, None] * conv_w          # fold BN scale into conv
            w_blocks.append(w_scaled)
            shift_blocks.append(shift)
            self._ref_params.append((w_scaled, shift))

        self.w_cat = jnp.concatenate(w_blocks, axis=0).astype(jnp.bfloat16)
        self.shift_cat = jnp.concatenate(shift_blocks, axis=0)[:, None]  # (M,1) f32

        # Block-diagonal mask over (nb*C_red, sum(b^2)).
        b2s = [b * b for b in self.bins]
        B2 = sum(b2s)
        mask = np.zeros((len(self.bins) * reduction_dim, B2), np.float32)
        off = 0
        for i, b2 in enumerate(b2s):
            mask[i * reduction_dim:(i + 1) * reduction_dim, off:off + b2] = 1.0
            off += b2
        self.mask = jnp.asarray(mask)
        self.b2_total = B2

    def _build_operators(self, H, W):
        poolT_cols, upT_rows = [], []
        for b in self.bins:
            Ph = _adaptive_pool_matrix(H, b)
            Pw = _adaptive_pool_matrix(W, b)
            poolT_cols.append(np.kron(Ph, Pw).T)          # (HW, b*b)
            Uh = _bilinear_up_matrix(H, b)
            Uw = _bilinear_up_matrix(W, b)
            upT_rows.append(np.kron(Uh, Uw).T)            # (b*b, HW)
        poolT = jnp.asarray(np.concatenate(poolT_cols, axis=1), jnp.bfloat16)
        upT = jnp.asarray(np.concatenate(upT_rows, axis=0), jnp.bfloat16)
        return poolT, upT

    def __call__(self, x, *, c_tile=512, hw_tile=512):
        # x: (N, C, H, W), NCHW like PyTorch.
        N, C, H, W = x.shape
        HW = H * W
        x_flat = x.reshape(N, C, HW)
        poolT, upT = self._build_operators(H, W)

        # Stage 1: all-bin pool + conv(+BN scale) + shift + ReLU.
        y = ppm_pool_conv(x_flat, poolT, self.w_cat, self.shift_cat, self.mask,
                          c_tile=c_tile)
        # Stage 2: all-bin bilinear upsample + write into concat layout with x.
        out = ppm_upsample_concat(x_flat, y, upT, hw_tile=hw_tile)

        c_total = C + len(self.bins) * self.reduction_dim
        return out.reshape(N, c_total, H, W)


# ----------------------------------------------------------------------------
# Pure-JAX f32 reference (for validation only).
# ----------------------------------------------------------------------------
def ppm_reference(x, ppm):
    N, C, H, W = x.shape
    HW = H * W
    xf = x.reshape(N, C, HW)
    outs = [x]
    for b, (w, sh) in zip(ppm.bins, ppm._ref_params):
        Ph = _adaptive_pool_matrix(H, b)
        Pw = _adaptive_pool_matrix(W, b)
        P = jnp.asarray(np.kron(Ph, Pw))                  # (b^2, HW)
        Uh = _bilinear_up_matrix(H, b)
        Uw = _bilinear_up_matrix(W, b)
        U = jnp.asarray(np.kron(Uh, Uw))                  # (HW, b^2)
        pooled = jnp.einsum('nch,bh->ncb', xf, P)
        z = jnp.einsum('rc,ncb->nrb', w, pooled)
        yb = jnp.maximum(z + sh[None, :, None], 0.0)
        up = jnp.einsum('nrb,hb->nrh', yb, U)
        outs.append(up.reshape(N, -1, H, W))
    return jnp.concatenate(outs, axis=1)


if __name__ == "__main__":
    key = jax.random.PRNGKey(0)
    k_x, k_p = jax.random.split(key)

    N, C, H, W = 2, 4, 16, 16
    reduction_dim = 2
    bins = (1, 2, 3, 6)

    x = jax.random.normal(k_x, (N, C, H, W), jnp.float32)

    ppm = PPM(in_dim=C, reduction_dim=reduction_dim, bins=bins, key=k_p)
    # hw_tile=128 so the toy spatial size (HW=256) exercises the HW-tiled grid.
    out = ppm(x, hw_tile=128)
    out = jax.block_until_ready(out)

    expected_channels = C + len(bins) * reduction_dim
    assert out.shape == (N, expected_channels, H, W), out.shape
    assert bool(jnp.all(jnp.isfinite(out)))
    # Passthrough channels must be bit-exact copies of x.
    assert bool(jnp.all(out[:, :C] == x))
    # Branch channels must match the f32 reference within bf16 tolerance.
    ref = ppm_reference(x, ppm)
    np.testing.assert_allclose(np.asarray(out), np.asarray(ref),
                               rtol=0.05, atol=0.05)

    print("KERNEL_OK")
</pallas_src>

<mosaic_0001>
module attributes {stable_mosaic.version = 11 : i64} {
  func.func @_pool_conv_kernel(%arg0: i32, %arg1: i32, %arg2: memref<1x4x256xf32, #tpu.memory_space<vmem>>, %arg3: memref<256x50xbf16, #tpu.memory_space<vmem>>, %arg4: memref<8x4xbf16, #tpu.memory_space<vmem>>, %arg5: memref<8x1xf32, #tpu.memory_space<vmem>>, %arg6: memref<8x50xf32, #tpu.memory_space<vmem>>, %arg7: memref<1x8x50xf32, #tpu.memory_space<vmem>>, %arg8: memref<8x50xf32, #tpu.memory_space<vmem>>) attributes {dimension_semantics = [#tpu.dimension_semantics<parallel>, #tpu.dimension_semantics<arbitrary>], iteration_bounds = array<i64: 2, 1>, scalar_prefetch = 0 : i64, scratch_operands = 1 : i64, tpu.core_type = #tpu.core_type<tc>, window_params = [{transform_indices = @transform_0, window_bounds = array<i64: 1, 4, 256>}, {pipeline_mode = #tpu.pipeline_mode<synchronous>, transform_indices = @transform_1, window_bounds = array<i64: 256, 50>}, {transform_indices = @transform_2, window_bounds = array<i64: 8, 4>}, {pipeline_mode = #tpu.pipeline_mode<synchronous>, transform_indices = @transform_3, window_bounds = array<i64: 8, 1>}, {pipeline_mode = #tpu.pipeline_mode<synchronous>, transform_indices = @transform_4, window_bounds = array<i64: 8, 50>}, {transform_indices = @transform_5, window_bounds = array<i64: 1, 8, 50>}]} {
    %c0_i32 = arith.constant 0 : i32
    %0 = arith.cmpi eq, %arg1, %c0_i32 : i32
    %1 = arith.extui %0 : i1 to i32
    %c0_i32_0 = arith.constant 0 : i32
    %2 = arith.cmpi ne, %1, %c0_i32_0 : i32
    scf.if %2 {
      %cst_14 = arith.constant 0.000000e+00 : f32
      %17 = vector.broadcast %cst_14 : f32 to vector<8x50xf32>
      %c0_15 = arith.constant 0 : index
      %c0_16 = arith.constant 0 : index
      %18 = vector.load %arg8[%c0_15, %c0_16] : memref<8x50xf32, #tpu.memory_space<vmem>>, vector<8x50xf32>
      tpu.vector_store %arg8[%c0_15, %c0_16], %17 {strides = array<i32>} : memref<8x50xf32, #tpu.memory_space<vmem>>, vector<8x50xf32>,
    } else {
    }
    %c0 = arith.constant 0 : index
    %c0_1 = arith.constant 0 : index
    %c0_2 = arith.constant 0 : index
    %3 = vector.load %arg2[%c0, %c0_1, %c0_2] : memref<1x4x256xf32, #tpu.memory_space<vmem>>, vector<1x4x256xf32>
    %4 = vector.shape_cast %3 : vector<1x4x256xf32> to vector<4x256xf32>
    %5 = arith.truncf %4 : vector<4x256xf32> to vector<4x256xbf16>
    %c0_3 = arith.constant 0 : index
    %c0_4 = arith.constant 0 : index
    %6 = vector.load %arg3[%c0_3, %c0_4] : memref<256x50xbf16, #tpu.memory_space<vmem>>, vector<256x50xbf16>
    %cst = arith.constant dense<0.000000e+00> : vector<4x50xf32>
    %7 = tpu.matmul %5, %6, %cst {dimension_numbers = #tpu.dot_dimension_numbers<[1], [0], [0], [1], [0, 0, 1, 1], [], []>} : vector<4x256xbf16>, vector<256x50xbf16>, vector<4x50xf32> -> vector<4x50xf32>
    %c0_5 = arith.constant 0 : index
    %c0_6 = arith.constant 0 : index
    %8 = vector.load %arg8[%c0_5, %c0_6] : memref<8x50xf32, #tpu.memory_space<vmem>>, vector<8x50xf32>
    %c0_7 = arith.constant 0 : index
    %c0_8 = arith.constant 0 : index
    %9 = vector.load %arg4[%c0_7, %c0_8] : memref<8x4xbf16, #tpu.memory_space<vmem>>, vector<8x4xbf16>
    %10 = arith.truncf %7 : vector<4x50xf32> to vector<4x50xbf16>
    %cst_9 = arith.constant dense<0.000000e+00> : vector<8x50xf32>
    %11 = tpu.matmul %9, %10, %cst_9 {dimension_numbers = #tpu.dot_dimension_numbers<[1], [0], [0], [1], [0, 0, 1, 1], [], []>} : vector<8x4xbf16>, vector<4x50xbf16>, vector<8x50xf32> -> vector<8x50xf32>
    %12 = arith.addf %8, %11 : vector<8x50xf32>
    %c0_10 = arith.constant 0 : index
    %c0_11 = arith.constant 0 : index
    %13 = vector.load %arg8[%c0_10, %c0_11] : memref<8x50xf32, #tpu.memory_space<vmem>>, vector<8x50xf32>
    tpu.vector_store %arg8[%c0_10, %c0_11], %12 {strides = array<i32>} : memref<8x50xf32, #tpu.memory_space<vmem>>, vector<8x50xf32>,
    %c0_i32_12 = arith.constant 0 : i32
    %14 = arith.cmpi eq, %arg1, %c0_i32_12 : i32
    %15 = arith.extui %14 : i1 to i32
    %c0_i32_13 = arith.constant 0 : i32
    %16 = arith.cmpi ne, %15, %c0_i32_13 : i32
    scf.if %16 {
      %c0_14 = arith.constant 0 : index
      %c0_15 = arith.constant 0 : index
      %17 = vector.load %arg8[%c0_14, %c0_15] : memref<8x50xf32, #tpu.memory_space<vmem>>, vector<8x50xf32>
      %c0_16 = arith.constant 0 : index
      %c0_17 = arith.constant 0 : index
      %18 = vector.load %arg5[%c0_16, %c0_17] : memref<8x1xf32, #tpu.memory_space<vmem>>, vector<8x1xf32>
      %19 = vector.broadcast %18 : vector<8x1xf32> to vector<8x50xf32>
      %20 = arith.addf %17, %19 : vector<8x50xf32>
      %cst_18 = arith.constant 0.000000e+00 : f32
      %21 = vector.broadcast %cst_18 : f32 to vector<8x50xf32>
      %22 = arith.maximumf %20, %21 : vector<8x50xf32>
      %c0_19 = arith.constant 0 : index
      %c0_20 = arith.constant 0 : index
      %23 = vector.load %arg6[%c0_19, %c0_20] : memref<8x50xf32, #tpu.memory_space<vmem>>, vector<8x50xf32>
      %24 = arith.mulf %22, %23 : vector<8x50xf32>
      %c0_21 = arith.constant 0 : index
      %c0_22 = arith.constant 0 : index
      %c0_23 = arith.constant 0 : index
      %25 = vector.load %arg7[%c0_21, %c0_22, %c0_23] : memref<1x8x50xf32, #tpu.memory_space<vmem>>, vector<1x8x50xf32>
      %26 = vector.shape_cast %25 : vector<1x8x50xf32> to vector<8x50xf32>
      %27 = vector.shape_cast %24 : vector<8x50xf32> to vector<1x8x50xf32>
      tpu.vector_store %arg7[%c0_21, %c0_22, %c0_23], %27 {strides = array<i32>} : memref<1x8x50xf32, #tpu.memory_space<vmem>>, vector<1x8x50xf32>,
    } else {
    }
    return
  }
  func.func @transform_0(%arg0: i32, %arg1: i32) -> (i32, i32, i32) {
    %c0_i32 = arith.constant 0 : i32
    %c0_i32_0 = arith.constant 0 : i32
    return %arg0, %arg1, %c0_i32 : i32, i32, i32
  }
  func.func @transform_1(%arg0: i32, %arg1: i32) -> (i32, i32) {
    %c0_i32 = arith.constant 0 : i32
    %c0_i32_0 = arith.constant 0 : i32
    %c0_i32_1 = arith.constant 0 : i32
    return %c0_i32, %c0_i32_0 : i32, i32
  }
  func.func @transform_2(%arg0: i32, %arg1: i32) -> (i32, i32) {
    %c0_i32 = arith.constant 0 : i32
    %c0_i32_0 = arith.constant 0 : i32
    return %c0_i32, %arg1 : i32, i32
  }
  func.func @transform_3(%arg0: i32, %arg1: i32) -> (i32, i32) {
    %c0_i32 = arith.constant 0 : i32
    %c0_i32_0 = arith.constant 0 : i32
    %c0_i32_1 = arith.constant 0 : i32
    return %c0_i32, %c0_i32_0 : i32, i32
  }
  func.func @transform_4(%arg0: i32, %arg1: i32) -> (i32, i32) {
    %c0_i32 = arith.constant 0 : i32
    %c0_i32_0 = arith.constant 0 : i32
    %c0_i32_1 = arith.constant 0 : i32
    return %c0_i32, %c0_i32_0 : i32, i32
  }
  func.func @transform_5(%arg0: i32, %arg1: i32) -> (i32, i32, i32) {
    %c0_i32 = arith.constant 0 : i32
    %c0_i32_0 = arith.constant 0 : i32
    %c0_i32_1 = arith.constant 0 : i32
    return %arg0, %c0_i32, %c0_i32_0 : i32, i32, i32
  }
}

</mosaic_0001>

<bundles_post_ra>
// kernel: tpu_custom_call.1
= control target key start
LH: loop header
LB: loop body
LE: loop exit
PB: predicated region body
PF: predicated region fallthrough
CT: control target
= control target key end

     0   :  { %10 = vsyncpa [#allocation4], 0  ;;  %s1044_s0 = inlined_call_operand.vmem [shape: f32[2,4,256], index: 0, kind: input, shape index: {}]   ;;  %s1045_s1 = inlined_call_operand.vmem [shape: bf16[256,50], index: 1, kind: input, shape index: {}]   ;;  %s1046_s2 = inlined_call_operand.vmem [shape: bf16[8,4], index: 2, kind: input, shape index: {}]   ;;  %s1047_s3 = inlined_call_operand.vmem [shape: f32[8,1], index: 3, kind: input, shape index: {}]   ;;  %s1048_s4 = inlined_call_operand.vmem [shape: f32[8,50], index: 4, kind: input, shape index: {}]   ;;  %s1049_s5 = inlined_call_operand.hbm [shape: f32[2,8,50], index: 5, kind: output, shape index: {}]  }
   0x1   :  { %12 = vsyncpa [#allocation4 + $0x1], 0  ;;  %s872_s18 = smov 0   ;;  %s874_s19 = smov 0  }
   0x2   :  { %s876_s20 = smov 0   ;;  %s878_s21 = smov 0  }
   0x3   :  { %s880_s22 = smov 0   ;;  %s882_s23 = smov 0  }
   0x4 LB: > { %s621_s24 = sadd.s32 4294967295, %s836_s23   ;;  %s622_s25 = sadd.s32 4294967294, %s836_s23   ;;  %s836_s23 = sphi %s882_s23, %s18_s23   ;;  %s832_s22 = sphi %s880_s22, %s1056_s22   ;;  %s828_s21 = sphi %s878_s21, %s1055_s21   ;;  %s824_s20 = sphi %s876_s20, %s1054_s20   ;;  %s820_s19 = sphi %s874_s19, %s1053_s19   ;;  %s816_s18 = sphi %s872_s18, %s1052_s18  }
   0x5   : > { %s30_s26 = sadd.s32 1, %s832_s22  ;;  %s154_s27 = sadd.s32 1, %s824_s20 }
   0x6   : > { %p32_p0 = scmp.ge.s32.totalorder %s30_s26, 2  ;;  %p164_p1 = scmp.ne.s32.totalorder %s824_s20, %s820_s19 }
   0x7   : > { %p165_p2 = scmp.eq.s32.totalorder %s621_s24, 1  ;;  %p170_p3 = scmp.ne.s32.totalorder %s820_s19, %s816_s18 }
   0x8   : > { %s1058_s26 = smov (%p32_p0, %s30_s26), 0  ;;  %p171_p5 = scmp.eq.s32.totalorder %s622_s25, 1 }
   0x9   : > { %p912_p4 = por %p165_p2, %p164_p1  ;;  %s151_s29 = ssub.s32 %s832_s22, %s1058_s26 }
   0xa   : > { %p626_p6 = scmp.ge.s32.totalorder %s836_s23, 1  ;;  %p152_p7 = scmp.eq.s32.totalorder %s151_s29, 0 }
   0xb   : > { %p919_p8 = por %p171_p5, %p170_p3  ;;  %p217_p9 = scmp.lt.s32.totalorder %s836_s23, 3 }
   0xc   : > { %s925_s6 = scalar_select %p152_p7, %s824_s20, %s154_s27  }
   0xd   : > { %p218_p10 = pnand %p626_p6, %p217_p9 }
   0xe   : > { %v741_v0 = vld [vmem:[%s1045_s1 + $0x40] sm:$0xff] (!%p218_p10)   ;;  %v743_v2 = vld [vmem:[%s1045_s1 + $0x48] sm:$0xff] (!%p218_p10)   ;;  %p253_p11 = scmp.lt.s32.totalorder (!%p218_p10), %s828_s21, 1  ;;  %v745_v4 = vld [vmem:[%s1045_s1 + $0x50] sm:$0xff] (!%p218_p10)   ;;  %vm271_vm0 = vcmask (!%p218_p10), 408576   ;;  %v838_v20 = vmov (!%p218_p10), 0.0  }
   0xf   : > { %221 = sbr.rel (%p218_p10) target bundleno = 510 (0x1fe), region = 40  ;;  %v742_v1 = vld [vmem:[%s1045_s1] sm:$0xff] (!%p218_p10)   ;;  %652 = vmatprep.subr.bf16.mxu0 (!%p218_p10), %v741_v0  ;;  %v744_v3 = vld [vmem:[%s1045_s1 + $0x8] sm:$0xff] (!%p218_p10)   ;;  %v746_v5 = vld [vmem:[%s1045_s1 + $0x10] sm:$0xff] (!%p218_p10)   ;;  %272 = vst.msk [vmem:[#allocation2] sm:$0xff] (!%p218_p10), %vm271_vm0, %v838_v20  ;;  %676 = vmatprep.subr.bf16.mxu1 (!%p218_p10), %v838_v20  ;;  %vm839_vm1 = vmmov (!%p218_p10), 0  }
  0x10   : > { %653 = vmatpush3.bf16.msra.mxu0 (!%p218_p10), %v742_v1  ;;  %v747_v6 = vld [vmem:[%s1045_s1 + $0x58] sm:$0xff] (!%p218_p10)   ;;  %v749_v8 = vld [vmem:[%s1045_s1 + $0x60] sm:$0xff] (!%p218_p10)   ;;  %v751_v10 = vld [vmem:[%s1045_s1 + $0x68] sm:$0xff] (!%p218_p10)   ;;  %678 = vmatprep.mubr.msk.bf16.mxu1 (!%p218_p10), %vm839_vm1, %v838_v20  ;;  %v840_v22 = vmov (!%p218_p10), 0   ;;  %vm454_vm2 = vcmask (!%p218_p10), 1041408   ;;  %vm450_vm3 = vcmask (!%p218_p10), 31744  }
  0x11   : > { %654 = vmatprep.subr.bf16.mxu0 (!%p218_p10), %v743_v2  ;;  %v748_v7 = vld [vmem:[%s1045_s1 + $0x18] sm:$0xff] (!%p218_p10)   ;;  %v750_v9 = vld [vmem:[%s1045_s1 + $0x20] sm:$0xff] (!%p218_p10)   ;;  %v752_v13 = vld [vmem:[%s1045_s1 + $0x28] sm:$0xff] (!%p218_p10)   ;;  %740 = vset.pattern.permute.xlu0 (!%p218_p10), %v840_v22  ;;  %s250_s24 = sand.u32 (!%p218_p10), 1, %s820_s19  }
  0x12   : > { %v753_v15 = vld [vmem:[%s1045_s1 + $0x70] sm:$0xff] (!%p218_p10)   ;;  %v755_v17 = vld [vmem:[%s1045_s1 + $0x78] sm:$0xff] (!%p218_p10)   ;;  %v505_v21 = vld [vmem:[%s1047_s3] sm:$0xff] (!%p218_p10)  ;;  %s627_s25 = sshll.u32 (!%p218_p10), %s250_s24, 3  ;;  %s517_s13 = scalar_lea.sflag (!%p218_p10), [#allocation4], %s250_s24 }
  0x13   : > { %v754_v16 = vld [vmem:[%s1045_s1 + $0x30] sm:$0xff] (!%p218_p10)   ;;  %v756_v18 = vld [vmem:[%s1045_s1 + $0x38] sm:$0xff] (!%p218_p10)   ;;  %508 = vperm.xlu0 (!%p218_p10), %740, %v505_v21   ;;  %v448_v30 = vld [vmem:[%s1046_s2] sm:$0xf] (!%p218_p10)  ;;  %s252_s8 = scalar_lea.vmem (!%p218_p10), [#allocation3], %s627_s25 }
  0x14   : > { %655 = vmatpush3.bf16.msra.mxu0 (!%p218_p10), %v744_v3  ;;  %v513_v40 = vld [vmem:[%s1048_s4] sm:$0xff] (!%p218_p10)  ;;  %s530_s9 = sshll.u32 (!%p218_p10), %s252_s8, 4  ;;  %s998_s9 = int_to_ptr.vmem [resolvable:$true] %s530_s9 }
  0x15   : > { %656 = vmatprep.subr.bf16.mxu0 (!%p218_p10), %v745_v4 }
  0x16   : > { %s254_s17 = scalar_select %p253_p11, %s828_s21, 1  ;;  %v447_v31 = vld [vmem:[#allocation2] sm:$0xff] }
  0x18   : > { %s651_s7 = sshll.u32 %s254_s17, 3  ;;  %657 = vmatpush3.bf16.msra.mxu0 %v746_v5 }
  0x19   : > { %658 = vmatprep.subr.bf16.mxu0 %v747_v6  ;;  %s261_s14 = scalar_lea.vmem %s1044_s0, %s651_s7  ;;  %s648_s7 = sshll.u32 %s828_s21, 7 }
  0x1a   : > { %v273_v11 = vld [vmem:[%s261_s14] sm:$0xff]  ;;  %s996_s12 = scalar_lea.hbm %s1049_s5, %s648_s7  ;;  %s758_s14 = scalar_lea.vmem %s998_s9, 128 }
  0x1b   : > { %v275_v12 = vcombine.high %v273_v11, %v273_v11  ;;  %v277_v19 = vpack.c.bf16 %v273_v11, %v273_v11  ;;  %p759_p12 = scmp.ne.s32.totalorder %s998_s9, %s758_s14  ;;  %s841_s21 = smov [#allocation3]  }
  0x1c   : > { %659 = vmatpush3.bf16.msra.mxu0 %v748_v7  ;;  %s762_s15 = sshll.u32 %s841_s21, 4  ;;  %s763_s15 = int_to_ptr.vmem [resolvable:$false] %s762_s15 }
  0x1d   : > { %660 = vmatprep.subr.bf16.mxu0 %v749_v8  ;;  %v278_v14 = vpack.c.bf16 %v275_v12, %v275_v12  ;;  %p760_p13 = pnand %p759_p12, %p912_p4  ;;  %s764_s16 = scalar_lea.vmem %s763_s15, 256 }
  0x1e   : > { %p765_p1 = scmp.lt.s32.totalorder %s998_s9, %s763_s15  ;;  %p766_p2 = scmp.lt.s32.totalorder %s764_s16, %s758_s14 }
  0x1f   : > { %439 = vmatprep.mubr.bf16.mxu0 %v278_v14  ;;  %p761_p0 = pneg %p760_p13 }
  0x20   : > { %661 = vmatpush3.bf16.msra.mxu0 %v750_v9  ;;  %p767_p3 = por %p766_p2, %p765_p1 }
  0x21   : > { %662 = vmatprep.subr.bf16.mxu0 %v751_v10 }
  0x22   : > { %p768_p5 = pnand %p767_p3, %p761_p0 }
  0x24   : > { %663 = vmatpush3.bf16.msra.mxu0 %v752_v13 }
  0x25   : > { %664 = vmatprep.subr.bf16.mxu0 %v753_v15 }
  0x28   : > { %665 = vmatpush3.bf16.msra.mxu0 %v754_v16 }
  0x29   : > { %666 = vmatprep.subr.bf16.mxu0 %v755_v17 }
  0x2c   : > { %667 = vmatpush3.bf16.msra.mxu0 %v756_v18 }
  0x2f   : > { %440 = vmatmul.mubr.bf16.vlgmr.msra.gmra.mrb[0].mxu0 %v277_v19 }
  0x92   : > { %v509_v37 = vpop.permute.xlu0 %508 }
 0x102   : > { %v668_v23 = vpop.f32.mrb[0].mxu0 }
 0x103   : > { %v669_v24 = vpop.f32.mrb[1].mxu0 }
 0x104   : > { %v670_v25 = vadd.f32 %v669_v24, %v668_v23  ;;  %v671_v26 = vpop.f32.mrb[2].mxu0 }
 0x105   : > { %v672_v27 = vpop.f32.mrb[3].mxu0 }
 0x106   : > { %v449_v28 = vpack.c.bf16 %v670_v25, %v670_v25 }
 0x108   : > { %v456_v29 = vsel %vm454_vm2, %v449_v28, 0 }
 0x109   : > { %677 = vmatpush3.bf16.msra.mxu1 %v456_v29 }
 0x10c   : > { %679 = vmatmul.mubr.msk.bf16.vlgmr.msra.gmra.mrb[0].mxu1 %vm450_vm3, %v448_v30 }
 0x1df   : > { %v492_v32 = vpop.f32.mrb[0].mxu1 }
 0x1e0   : > { %v498_v33 = vadd.f32 %v492_v32, %v447_v31  ;;  %v680_v34 = vpop.f32.mrb[1].mxu1 }
 0x1e1   : > { %v495_v35 = vpop.f32.mrb[2].mxu1 }
 0x1e2   : > { %500 = vst.msk [vmem:[#allocation2] sm:$0xff] %vm271_vm0, %v498_v33  ;;  %v681_v36 = vpop.f32.mrb[3].mxu1 }
 0x1e9   : > { %v504_v38 = vld [vmem:[#allocation2] sm:$0xff] }
 0x1ea   : > { %v511_v39 = vadd.f32 %v509_v37, %v504_v38 }
 0x1ec   : > { %v512_v41 = vmax.f32 %v511_v39, 0.0 }
 0x1ee   : > { %v514_v42 = vmul.f32 %v513_v40, %v512_v41 }
 0x1f0   : > { %515 = vst.msk [vmem:[%s252_s8] sm:$0xff] %vm271_vm0, %v514_v42 }
 0x1f1   : > { %771 = shalt.err (!%p768_p5)
}
 0x1f2   : > { %s772_s17 = scalar_lea.hbm %s996_s12, 128  ;;  %s776_s27 = scalar_lea.hbm %s1049_s5, 256 }
 0x1f3   : > { %p773_p6 = scmp.ne.s32.totalorder %s996_s12, %s772_s17  ;;  %p777_p10 = scmp.lt.u32.totalorder %s996_s12, %s1049_s5 }
 0x1f4   : > { %p778_p11 = scmp.lt.u32.totalorder %s776_s27, %s772_s17  ;;  %p780_p13 = scmp.lt.u32.totalorder %s772_s17, %s996_s12 }
 0x1f5   : > { %p774_p7 = pnand %p773_p6, %p912_p4 }
 0x1f6   : > { %p779_p12 = por %p778_p11, %p777_p10 }
 0x1f7   : > { %p775_p9 = pneg %p774_p7 }
 0x1f8   : > { %p781_p0 = por %p780_p13, %p779_p12 }
 0x1fa   : > { %p782_p1 = pnand %p781_p0, %p775_p9 }
 0x1fc   : > { %785 = shalt.err (!%p782_p1)
}
 0x1fd   : > { %682 = dma.vmem_to_hbm [thread:$0]  (%p912_p4), %s998_s9, 128, %s996_s12, %s517_s13  }
 0x1fe PF: > { %p688_p2 = scmp.ge.s32.totalorder %s836_s23, 2  ;;  %s542_s8 = sand.u32 1, %s816_s18  }
 0x1ff   : > { %s543_s10 = scalar_lea.sflag [#allocation4], %s542_s8 }
 0x200   : > { %p685_p3 = pnand %p688_p2, %p919_p8 }
 0x202   : > { %811 = dma.done.wait (!%p685_p3), %s543_s10, 128  }
 0x203   : > { %813 = vsyncadd (!%p685_p3), %s543_s10, 4294967168  ;;  %s18_s23 = sadd.s32 1, %s836_s23   ;;  %s1052_s18 = smov %s820_s19 }
 0x204   : > { %p15_p5 = scmp.ge.s32.totalorder %s18_s23, 4   ;;  %s1053_s19 = smov %s824_s20 }
 0x205   : > { %s1054_s20 = smov %s925_s6  ;;  %s1055_s21 = smov %s832_s22 }
 0x206   : > { %s1056_s22 = smov %s1058_s26  ;;  %17 = sbr.rel (!%p15_p5) target bundleno = 4 (0x4), region = 86 }
 0x20d   :  { %548 = vsyncpa [#allocation4], 1 }
 0x20e   :  { %550 = vsyncpa [#allocation4 + $0x1], 1 }

</bundles_post_ra>
